<compile_context>
chip_gen: v5e
topology: v5e:2x2
jax: 0.10.0
libtpu: 0.0.40
codegen_flags: <defaults>
</compile_context>

<pallas_src>
import functools

import jax
import jax.numpy as jnp
from jax.experimental import pallas as pl
from jax.experimental.pallas import tpu as pltpu


_NEG = -1.0e30  # finite "-inf" used to neutralize padded class lanes


def _kldiv_kernel(logits_ref, targets_ref, out_ref,
                  m_x, s_x, m_t, s_t, acc,
                  *, T, B, C, tb, tc):
    """Streaming KL over class blocks; one scalar partial per row block."""
    i = pl.program_id(0)          # row-block index (parallel)
    j = pl.program_id(1)          # class-block index (reduction, arbitrary)
    nj = pl.num_programs(1)

    @pl.when(j == 0)
    def _():
        m_x[...] = jnp.full(m_x.shape, -jnp.inf, jnp.float32)
        m_t[...] = jnp.full(m_t.shape, -jnp.inf, jnp.float32)
        s_x[...] = jnp.zeros(s_x.shape, jnp.float32)
        s_t[...] = jnp.zeros(s_t.shape, jnp.float32)
        acc[...] = jnp.zeros(acc.shape, jnp.float32)

    x = logits_ref[...].astype(jnp.float32)
    t = targets_ref[...].astype(jnp.float32)
    if T != 1.0:
        inv_T = 1.0 / T
        x = x * inv_T
        t = t * inv_T

    if C % tc != 0:
        # Statically ragged last class block: padded lanes become a huge
        # negative -> exp underflows to exactly 0 and (t - x) == 0 there, so
        # they contribute nothing to any accumulator.
        cols = j * tc + jax.lax.broadcasted_iota(jnp.int32, (tb, tc), 1)
        valid = cols < C
        x = jnp.where(valid, x, _NEG)
        t = jnp.where(valid, t, _NEG)

    # Online softmax statistics for log_softmax(logits / T): (m_x, S_x).
    m_x_new = jnp.maximum(m_x[...], jnp.max(x, axis=-1, keepdims=True))
    s_x[...] = s_x[...] * jnp.exp(m_x[...] - m_x_new) + jnp.sum(
        jnp.exp(x - m_x_new), axis=-1, keepdims=True)
    m_x[...] = m_x_new

    # Online stats for softmax(targets / T) plus the weighted (t - x) sum:
    #   KL_row = A / S_t + (m_x - m_t) + log S_x - log S_t
    #   A = sum_c exp(t_c - m_t) * (t_c - x_c)
    m_t_new = jnp.maximum(m_t[...], jnp.max(t, axis=-1, keepdims=True))
    alpha_t = jnp.exp(m_t[...] - m_t_new)
    e_t = jnp.exp(t - m_t_new)
    s_t[...] = s_t[...] * alpha_t + jnp.sum(e_t, axis=-1, keepdims=True)
    acc[...] = acc[...] * alpha_t + jnp.sum(e_t * (t - x), axis=-1,
                                            keepdims=True)
    m_t[...] = m_t_new

    @pl.when(j == nj - 1)
    def _():
        kl = acc[...] * pl.reciprocal(s_t[...], approx=False) + (
            m_x[...] - m_t[...] + jnp.log(s_x[...]) - jnp.log(s_t[...]))
        if B % tb != 0:
            # Statically ragged last row block: rows past B hold garbage (may
            # be NaN/Inf); a true select zeroes them before the reduction.
            rows = i * tb + jax.lax.broadcasted_iota(jnp.int32, (tb, 1), 0)
            kl = jnp.where(rows < B, kl, 0.0)
        out_ref[...] = jnp.sum(kl, axis=0, keepdims=True).reshape(1, 1, 1)


def _vmem_budget_bytes():
    """Generation-aware working-set budget and vmem limit."""
    phys = None
    try:
        phys = pltpu.get_tpu_info().vmem_capacity_bytes
    except Exception:
        phys = None
    if not phys:
        phys = 64 << 20  # conservative floor: v7x per-TensorCore VMEM
    budget = min(int(phys * 0.70), 90 << 20)   # ~45 MiB v7x, ~90 MiB v5e/v6e
    limit = min(int(phys * 0.80), 100 << 20)   # ~51 MiB v7x, ~100 MiB v5e/v6e
    return budget, limit


def _choose_tiles(B, C, in_itemsize, budget_bytes):
    """Pick (row_tile, class_tile) for the 2-D grid.

    Budget model per tile element: 2 inputs x 2 pipeline buffers at the input
    dtype width + ~8 live (tb, tc) f32 intermediates inside the body.
    """
    per_elem = 4 * in_itemsize + 8 * 4

    def fit_rows(n):
        # Largest valid row tile <= n rows: a multiple of 8, or the full batch.
        if n >= B:
            return B
        return max(8, (n // 8) * 8)

    tb_fit = budget_bytes // (C * per_elem)
    if C <= 128 or tb_fit >= 64:
        # Full class dim per step; spend the remaining budget on rows.
        tc = C
        tb = fit_rows(min(tb_fit, 4096))
    else:
        # Large-vocab path: tile the class axis (multiples of 128) and keep a
        # healthy row tile so per-step overhead is amortized.
        tb = fit_rows(256)
        tc_fit = (budget_bytes // (tb * per_elem) // 128) * 128
        c_cap = C if C % 128 == 0 else (C // 128) * 128
        tc = max(128, min(tc_fit, c_cap))

    # v7x megacore: ensure >= 2 row blocks when there is enough work to split
    # across the two TensorCores (neutral on single-TC v5e/v6e).
    if pl.cdiv(B, tb) == 1 and B >= 16 and B * C >= (1 << 20):
        tb = max(8, (((B + 1) // 2 + 7) // 8) * 8)

    return int(tb), int(tc)


def kldiv_pallas(logits, targets, T=1.0, reduction="batchmean"):
    """Pallas implementation of kldiv(logits, targets, T, reduction)."""
    assert logits.shape == targets.shape and logits.ndim == 2
    B, C = logits.shape

    budget, vmem_limit = _vmem_budget_bytes()
    itemsize = max(logits.dtype.itemsize, targets.dtype.itemsize)
    tb, tc = _choose_tiles(B, C, itemsize, budget)
    nbi = pl.cdiv(B, tb)
    nbj = pl.cdiv(C, tc)

    kernel = functools.partial(
        _kldiv_kernel, T=float(T), B=B, C=C, tb=tb, tc=tc)

    partials = pl.pallas_call(
        kernel,
        out_shape=jax.ShapeDtypeStruct((nbi, 1, 1), jnp.float32),
        grid_spec=pltpu.PrefetchScalarGridSpec(
            num_scalar_prefetch=0,
            grid=(nbi, nbj),
            in_specs=[
                pl.BlockSpec((tb, tc), lambda i, j: (i, j)),
                pl.BlockSpec((tb, tc), lambda i, j: (i, j)),
            ],
            # One scalar partial per row block; resident across the class axis.
            out_specs=pl.BlockSpec((1, 1, 1), lambda i, j: (i, 0, 0)),
            scratch_shapes=[pltpu.VMEM((tb, 1), jnp.float32)] * 5,
        ),
        compiler_params=pltpu.CompilerParams(
            dimension_semantics=("parallel", "arbitrary"),
            vmem_limit_bytes=vmem_limit,
        ),
    )(logits, targets)

    total = jnp.sum(partials)
    if reduction == "batchmean":
        out = total / B
    elif reduction == "sum":
        out = total
    elif reduction == "mean":
        out = total / (B * C)
    else:
        raise ValueError(f"unsupported reduction: {reduction}")
    return out * (T * T)


def kldiv_ref(logits, targets, T=1.0):
    """Pure-JAX reference for verification."""
    log_q = jax.nn.log_softmax(logits.astype(jnp.float32) / T, axis=1)
    p = jax.nn.softmax(targets.astype(jnp.float32) / T, axis=1)
    log_p = jax.nn.log_softmax(targets.astype(jnp.float32) / T, axis=1)
    return jnp.sum(p * (log_p - log_q)) / logits.shape[0] * (T * T)


if __name__ == "__main__":
    key = jax.random.PRNGKey(0)
    k1, k2 = jax.random.split(key)

    B, C = 8, 32  # small shapes: batch=8, classes=32
    T = 2.0

    logits = jax.random.normal(k1, (B, C), dtype=jnp.float32)
    targets = jax.random.normal(k2, (B, C), dtype=jnp.float32)

    out = kldiv_pallas(logits, targets, T=T, reduction="batchmean")
    out = jax.block_until_ready(out)

    ref = kldiv_ref(logits, targets, T=T)
    assert jnp.allclose(out, ref, rtol=1e-5, atol=1e-6), (out, ref)

    print("KERNEL_OK")
</pallas_src>

<mosaic_0001>
module attributes {stable_mosaic.version = 11 : i64} {
  func.func @_kldiv_kernel(%arg0: i32, %arg1: i32, %arg2: memref<8x32xf32, #tpu.memory_space<vmem>>, %arg3: memref<8x32xf32, #tpu.memory_space<vmem>>, %arg4: memref<1x1x1xf32, #tpu.memory_space<vmem>>, %arg5: memref<8x1xf32, #tpu.memory_space<vmem>>, %arg6: memref<8x1xf32, #tpu.memory_space<vmem>>, %arg7: memref<8x1xf32, #tpu.memory_space<vmem>>, %arg8: memref<8x1xf32, #tpu.memory_space<vmem>>, %arg9: memref<8x1xf32, #tpu.memory_space<vmem>>) attributes {dimension_semantics = [#tpu.dimension_semantics<parallel>, #tpu.dimension_semantics<arbitrary>], iteration_bounds = array<i64: 1, 1>, scalar_prefetch = 0 : i64, scratch_operands = 5 : i64, tpu.core_type = #tpu.core_type<tc>, window_params = [{transform_indices = @transform_0, window_bounds = array<i64: 8, 32>}, {transform_indices = @transform_1, window_bounds = array<i64: 8, 32>}, {transform_indices = @transform_2, window_bounds = array<i64: 1, 1, 1>}]} {
    %c0_i32 = arith.constant 0 : i32
    %0 = arith.cmpi eq, %arg1, %c0_i32 : i32
    %1 = arith.extui %0 : i1 to i32
    %c0_i32_0 = arith.constant 0 : i32
    %2 = arith.cmpi ne, %1, %c0_i32_0 : i32
    scf.if %2 {
      %cst_36 = arith.constant 0xFF800000 : f32
      %54 = vector.broadcast %cst_36 : f32 to vector<8x1xf32>
      %c0_37 = arith.constant 0 : index
      %c0_38 = arith.constant 0 : index
      %55 = vector.load %arg5[%c0_37, %c0_38] : memref<8x1xf32, #tpu.memory_space<vmem>>, vector<8x1xf32>
      tpu.vector_store %arg5[%c0_37, %c0_38], %54 {strides = array<i32>} : memref<8x1xf32, #tpu.memory_space<vmem>>, vector<8x1xf32>,
      %cst_39 = arith.constant 0xFF800000 : f32
      %56 = vector.broadcast %cst_39 : f32 to vector<8x1xf32>
      %c0_40 = arith.constant 0 : index
      %c0_41 = arith.constant 0 : index
      %57 = vector.load %arg7[%c0_40, %c0_41] : memref<8x1xf32, #tpu.memory_space<vmem>>, vector<8x1xf32>
      tpu.vector_store %arg7[%c0_40, %c0_41], %56 {strides = array<i32>} : memref<8x1xf32, #tpu.memory_space<vmem>>, vector<8x1xf32>,
      %cst_42 = arith.constant 0.000000e+00 : f32
      %58 = vector.broadcast %cst_42 : f32 to vector<8x1xf32>
      %c0_43 = arith.constant 0 : index
      %c0_44 = arith.constant 0 : index
      %59 = vector.load %arg6[%c0_43, %c0_44] : memref<8x1xf32, #tpu.memory_space<vmem>>, vector<8x1xf32>
      tpu.vector_store %arg6[%c0_43, %c0_44], %58 {strides = array<i32>} : memref<8x1xf32, #tpu.memory_space<vmem>>, vector<8x1xf32>,
      %cst_45 = arith.constant 0.000000e+00 : f32
      %60 = vector.broadcast %cst_45 : f32 to vector<8x1xf32>
      %c0_46 = arith.constant 0 : index
      %c0_47 = arith.constant 0 : index
      %61 = vector.load %arg8[%c0_46, %c0_47] : memref<8x1xf32, #tpu.memory_space<vmem>>, vector<8x1xf32>
      tpu.vector_store %arg8[%c0_46, %c0_47], %60 {strides = array<i32>} : memref<8x1xf32, #tpu.memory_space<vmem>>, vector<8x1xf32>,
      %cst_48 = arith.constant 0.000000e+00 : f32
      %62 = vector.broadcast %cst_48 : f32 to vector<8x1xf32>
      %c0_49 = arith.constant 0 : index
      %c0_50 = arith.constant 0 : index
      %63 = vector.load %arg9[%c0_49, %c0_50] : memref<8x1xf32, #tpu.memory_space<vmem>>, vector<8x1xf32>
      tpu.vector_store %arg9[%c0_49, %c0_50], %62 {strides = array<i32>} : memref<8x1xf32, #tpu.memory_space<vmem>>, vector<8x1xf32>,
    } else {
    }
    %c0 = arith.constant 0 : index
    %c0_1 = arith.constant 0 : index
    %3 = vector.load %arg2[%c0, %c0_1] : memref<8x32xf32, #tpu.memory_space<vmem>>, vector<8x32xf32>
    %c0_2 = arith.constant 0 : index
    %c0_3 = arith.constant 0 : index
    %4 = vector.load %arg3[%c0_2, %c0_3] : memref<8x32xf32, #tpu.memory_space<vmem>>, vector<8x32xf32>
    %cst = arith.constant 5.000000e-01 : f32
    %5 = vector.broadcast %cst : f32 to vector<8x32xf32>
    %6 = arith.mulf %3, %5 : vector<8x32xf32>
    %cst_4 = arith.constant 5.000000e-01 : f32
    %7 = vector.broadcast %cst_4 : f32 to vector<8x32xf32>
    %8 = arith.mulf %4, %7 : vector<8x32xf32>
    %c0_5 = arith.constant 0 : index
    %c0_6 = arith.constant 0 : index
    %9 = vector.load %arg5[%c0_5, %c0_6] : memref<8x1xf32, #tpu.memory_space<vmem>>, vector<8x1xf32>
    %cst_7 = arith.constant dense<0xFF800000> : vector<8xf32>
    %10 = vector.multi_reduction <maximumf>, %6, %cst_7 [1] : vector<8x32xf32> to vector<8xf32>
    %11 = vector.shape_cast %10 : vector<8xf32> to vector<8x1xf32>
    %12 = arith.maximumf %9, %11 : vector<8x1xf32>
    %c0_8 = arith.constant 0 : index
    %c0_9 = arith.constant 0 : index
    %13 = vector.load %arg6[%c0_8, %c0_9] : memref<8x1xf32, #tpu.memory_space<vmem>>, vector<8x1xf32>
    %c0_10 = arith.constant 0 : index
    %c0_11 = arith.constant 0 : index
    %14 = vector.load %arg5[%c0_10, %c0_11] : memref<8x1xf32, #tpu.memory_space<vmem>>, vector<8x1xf32>
    %15 = arith.subf %14, %12 : vector<8x1xf32>
    %16 = math.exp %15 : vector<8x1xf32>
    %17 = arith.mulf %13, %16 : vector<8x1xf32>
    %18 = vector.broadcast %12 : vector<8x1xf32> to vector<8x32xf32>
    %19 = arith.subf %6, %18 : vector<8x32xf32>
    %20 = math.exp %19 : vector<8x32xf32>
    %cst_12 = arith.constant dense<0.000000e+00> : vector<8xf32>
    %21 = vector.multi_reduction <add>, %20, %cst_12 [1] : vector<8x32xf32> to vector<8xf32>
    %22 = vector.shape_cast %21 : vector<8xf32> to vector<8x1xf32>
    %23 = arith.addf %17, %22 : vector<8x1xf32>
    %c0_13 = arith.constant 0 : index
    %c0_14 = arith.constant 0 : index
    %24 = vector.load %arg6[%c0_13, %c0_14] : memref<8x1xf32, #tpu.memory_space<vmem>>, vector<8x1xf32>
    tpu.vector_store %arg6[%c0_13, %c0_14], %23 {strides = array<i32>} : memref<8x1xf32, #tpu.memory_space<vmem>>, vector<8x1xf32>,
    %c0_15 = arith.constant 0 : index
    %c0_16 = arith.constant 0 : index
    %25 = vector.load %arg5[%c0_15, %c0_16] : memref<8x1xf32, #tpu.memory_space<vmem>>, vector<8x1xf32>
    tpu.vector_store %arg5[%c0_15, %c0_16], %12 {strides = array<i32>} : memref<8x1xf32, #tpu.memory_space<vmem>>, vector<8x1xf32>,
    %c0_17 = arith.constant 0 : index
    %c0_18 = arith.constant 0 : index
    %26 = vector.load %arg7[%c0_17, %c0_18] : memref<8x1xf32, #tpu.memory_space<vmem>>, vector<8x1xf32>
    %cst_19 = arith.constant dense<0xFF800000> : vector<8xf32>
    %27 = vector.multi_reduction <maximumf>, %8, %cst_19 [1] : vector<8x32xf32> to vector<8xf32>
    %28 = vector.shape_cast %27 : vector<8xf32> to vector<8x1xf32>
    %29 = arith.maximumf %26, %28 : vector<8x1xf32>
    %c0_20 = arith.constant 0 : index
    %c0_21 = arith.constant 0 : index
    %30 = vector.load %arg7[%c0_20, %c0_21] : memref<8x1xf32, #tpu.memory_space<vmem>>, vector<8x1xf32>
    %31 = arith.subf %30, %29 : vector<8x1xf32>
    %32 = math.exp %31 : vector<8x1xf32>
    %33 = vector.broadcast %29 : vector<8x1xf32> to vector<8x32xf32>
    %34 = arith.subf %8, %33 : vector<8x32xf32>
    %35 = math.exp %34 : vector<8x32xf32>
    %c0_22 = arith.constant 0 : index
    %c0_23 = arith.constant 0 : index
    %36 = vector.load %arg8[%c0_22, %c0_23] : memref<8x1xf32, #tpu.memory_space<vmem>>, vector<8x1xf32>
    %37 = arith.mulf %36, %32 : vector<8x1xf32>
    %cst_24 = arith.constant dense<0.000000e+00> : vector<8xf32>
    %38 = vector.multi_reduction <add>, %35, %cst_24 [1] : vector<8x32xf32> to vector<8xf32>
    %39 = vector.shape_cast %38 : vector<8xf32> to vector<8x1xf32>
    %40 = arith.addf %37, %39 : vector<8x1xf32>
    %c0_25 = arith.constant 0 : index
    %c0_26 = arith.constant 0 : index
    %41 = vector.load %arg8[%c0_25, %c0_26] : memref<8x1xf32, #tpu.memory_space<vmem>>, vector<8x1xf32>
    tpu.vector_store %arg8[%c0_25, %c0_26], %40 {strides = array<i32>} : memref<8x1xf32, #tpu.memory_space<vmem>>, vector<8x1xf32>,
    %c0_27 = arith.constant 0 : index
    %c0_28 = arith.constant 0 : index
    %42 = vector.load %arg9[%c0_27, %c0_28] : memref<8x1xf32, #tpu.memory_space<vmem>>, vector<8x1xf32>
    %43 = arith.mulf %42, %32 : vector<8x1xf32>
    %44 = arith.subf %8, %6 : vector<8x32xf32>
    %45 = arith.mulf %35, %44 : vector<8x32xf32>
    %cst_29 = arith.constant dense<0.000000e+00> : vector<8xf32>
    %46 = vector.multi_reduction <add>, %45, %cst_29 [1] : vector<8x32xf32> to vector<8xf32>
    %47 = vector.shape_cast %46 : vector<8xf32> to vector<8x1xf32>
    %48 = arith.addf %43, %47 : vector<8x1xf32>
    %c0_30 = arith.constant 0 : index
    %c0_31 = arith.constant 0 : index
    %49 = vector.load %arg9[%c0_30, %c0_31] : memref<8x1xf32, #tpu.memory_space<vmem>>, vector<8x1xf32>
    tpu.vector_store %arg9[%c0_30, %c0_31], %48 {strides = array<i32>} : memref<8x1xf32, #tpu.memory_space<vmem>>, vector<8x1xf32>,
    %c0_32 = arith.constant 0 : index
    %c0_33 = arith.constant 0 : index
    %50 = vector.load %arg7[%c0_32, %c0_33] : memref<8x1xf32, #tpu.memory_space<vmem>>, vector<8x1xf32>
    tpu.vector_store %arg7[%c0_32, %c0_33], %29 {strides = array<i32>} : memref<8x1xf32, #tpu.memory_space<vmem>>, vector<8x1xf32>,
    %c0_i32_34 = arith.constant 0 : i32
    %51 = arith.cmpi eq, %arg1, %c0_i32_34 : i32
    %52 = arith.extui %51 : i1 to i32
    %c0_i32_35 = arith.constant 0 : i32
    %53 = arith.cmpi ne, %52, %c0_i32_35 : i32
    scf.if %53 {
      %c0_36 = arith.constant 0 : index
      %c0_37 = arith.constant 0 : index
      %54 = vector.load %arg9[%c0_36, %c0_37] : memref<8x1xf32, #tpu.memory_space<vmem>>, vector<8x1xf32>
      %c0_38 = arith.constant 0 : index
      %c0_39 = arith.constant 0 : index
      %55 = vector.load %arg8[%c0_38, %c0_39] : memref<8x1xf32, #tpu.memory_space<vmem>>, vector<8x1xf32>
      %56 = tpu.reciprocal %55 : vector<8x1xf32> -> vector<8x1xf32>
      %57 = arith.mulf %54, %56 : vector<8x1xf32>
      %c0_40 = arith.constant 0 : index
      %c0_41 = arith.constant 0 : index
      %58 = vector.load %arg5[%c0_40, %c0_41] : memref<8x1xf32, #tpu.memory_space<vmem>>, vector<8x1xf32>
      %c0_42 = arith.constant 0 : index
      %c0_43 = arith.constant 0 : index
      %59 = vector.load %arg7[%c0_42, %c0_43] : memref<8x1xf32, #tpu.memory_space<vmem>>, vector<8x1xf32>
      %60 = arith.subf %58, %59 : vector<8x1xf32>
      %c0_44 = arith.constant 0 : index
      %c0_45 = arith.constant 0 : index
      %61 = vector.load %arg6[%c0_44, %c0_45] : memref<8x1xf32, #tpu.memory_space<vmem>>, vector<8x1xf32>
      %62 = math.log %61 : vector<8x1xf32>
      %63 = arith.addf %60, %62 : vector<8x1xf32>
      %c0_46 = arith.constant 0 : index
      %c0_47 = arith.constant 0 : index
      %64 = vector.load %arg8[%c0_46, %c0_47] : memref<8x1xf32, #tpu.memory_space<vmem>>, vector<8x1xf32>
      %65 = math.log %64 : vector<8x1xf32>
      %66 = arith.subf %63, %65 : vector<8x1xf32>
      %67 = arith.addf %57, %66 : vector<8x1xf32>
      %cst_48 = arith.constant dense<0.000000e+00> : vector<1xf32>
      %68 = vector.multi_reduction <add>, %67, %cst_48 [0] : vector<8x1xf32> to vector<1xf32>
      %69 = vector.shape_cast %68 : vector<1xf32> to vector<1x1xf32>
      %70 = vector.shape_cast %69 : vector<1x1xf32> to vector<1x1x1xf32>
      %c0_49 = arith.constant 0 : index
      %c0_50 = arith.constant 0 : index
      %c0_51 = arith.constant 0 : index
      %71 = vector.load %arg4[%c0_49, %c0_50, %c0_51] : memref<1x1x1xf32, #tpu.memory_space<vmem>>, vector<1x1x1xf32>
      tpu.vector_store %arg4[%c0_49, %c0_50, %c0_51], %70 {strides = array<i32>} : memref<1x1x1xf32, #tpu.memory_space<vmem>>, vector<1x1x1xf32>,
    } else {
    }
    return
  }
  func.func @transform_0(%arg0: i32, %arg1: i32) -> (i32, i32) {
    %c0_i32 = arith.constant 0 : i32
    return %arg0, %arg1 : i32, i32
  }
  func.func @transform_1(%arg0: i32, %arg1: i32) -> (i32, i32) {
    %c0_i32 = arith.constant 0 : i32
    return %arg0, %arg1 : i32, i32
  }
  func.func @transform_2(%arg0: i32, %arg1: i32) -> (i32, i32, i32) {
    %c0_i32 = arith.constant 0 : i32
    %c0_i32_0 = arith.constant 0 : i32
    %c0_i32_1 = arith.constant 0 : i32
    return %arg0, %c0_i32, %c0_i32_0 : i32, i32, i32
  }
}

</mosaic_0001>

<bundles_post_ra>
// kernel: tpu_custom_call.1
= control target key start
LH: loop header
LB: loop body
LE: loop exit
PB: predicated region body
PF: predicated region fallthrough
CT: control target
= control target key end

     0   :  { %7 = vsyncpa [#allocation8], 0  ;;  %s317_s0 = inlined_call_operand.hbm [shape: f32[8,32], index: 0, kind: input, shape index: {}]   ;;  %s318_s1 = inlined_call_operand.hbm [shape: f32[8,32], index: 1, kind: input, shape index: {}]   ;;  %s319_s2 = inlined_call_operand.hbm [shape: f32[1,1,1], index: 2, kind: output, shape index: {}]  }
   0x1   :  { %8 = vsyncpa [#allocation11], 0 }
   0x2   :  { %9 = vsyncpa [#allocation9], 0  ;;  %s15_s11 = sshll.u32 %s317_s0, 4  ;;  %s271_s12 = smov [#allocation7]   ;;  %s16_s11 = int_to_ptr.hbm [resolvable:$true] %s15_s11 }
   0x3   :  { %s17_s13 = sshll.u32 %s271_s12, 4  ;;  %s26_s16 = sshll.u32 %s318_s1, 4  ;;  %s18_s13 = int_to_ptr.vmem [resolvable:$true] %s17_s13  ;;  %s27_s16 = int_to_ptr.hbm [resolvable:$true] %s26_s16 }
   0x4   :  { %20 = dma.hbm_to_vmem [thread:$0]  %s16_s11, 128, %s18_s13, [#allocation8]  }
   0x5   :  { %s272_s17 = smov [#allocation10]  }
   0x6   :  { %s28_s18 = sshll.u32 %s272_s17, 4  ;;  %s29_s18 = int_to_ptr.vmem [resolvable:$true] %s28_s18 }
   0x7   :  { %31 = dma.hbm_to_vmem [thread:$0]  %s27_s16, 128, %s29_s18, [#allocation11]  }
   0x8   :  { %265 = dma.done.wait [#allocation8], 128  }
   0x9   :  { %266 = vsyncadd [#allocation8], 4294967168 }
   0xa   :  { %267 = dma.done.wait [#allocation11], 128  }
   0xb   :  { %268 = vsyncadd [#allocation11], 4294967168  ;;  %vm44_vm0 = vcmask 7168   ;;  %v273_v0 = vmov -inf   ;;  %v51_v1 = vld [vmem:[#allocation10] sm:$0xff]  ;;  %vm55_vm1 = vcmask 261120  }
   0xc   :  { %46 = vst.msk [vmem:[#allocation4] sm:$0xff] %vm44_vm0, %v273_v0  ;;  %v53_v2 = vmul.f32 0.5, %v51_v1  ;;  %v50_v3 = vld [vmem:[#allocation7] sm:$0xff]  ;;  %v274_v7 = vmov 0   ;;  %v275_v8 = vmov 0.0   ;;  %s276_s0 = smov [#allocation12]  }
   0xd   :  { %45 = vst.msk [vmem:[#allocation2] sm:$0xff] %vm44_vm0, %v273_v0  ;;  %v52_v5 = vmul.f32 0.5, %v50_v3  ;;  %177 = vset.pattern.permute.xlu1 %v274_v7  ;;  %178 = vset.pattern.permute.xlu0 %v274_v7  ;;  %s158_s1 = sshll.u32 %s276_s0, 4  ;;  %s160_s21 = sshll.u32 %s319_s2, 4  ;;  %vm151_vm6 = vcmask 0   ;;  %s159_s1 = int_to_ptr.vmem [resolvable:$true] %s158_s1  ;;  %s161_s21 = int_to_ptr.hbm [resolvable:$true] %s160_s21 }
   0xe   :  { %v81_v4 = vsel %vm55_vm1, %v53_v2, -inf  ;;  %48 = vst.msk [vmem:[#allocation5] sm:$0xff] %vm44_vm0, %v275_v8 }
   0xf   :  { %82 = vmax.xlane.f32.xlu0 %v81_v4  ;;  %v56_v6 = vsel %vm55_vm1, %v52_v5, -inf  ;;  %47 = vst.msk [vmem:[#allocation3] sm:$0xff] %vm44_vm0, %v275_v8  ;;  %v105_v21 = vsub.f32 %v53_v2, %v52_v5 }
  0x10   :  { %49 = vst.msk [vmem:[#allocation6] sm:$0xff] %vm44_vm0, %v275_v8 }
  0x13   :  { %v80_v9 = vld [vmem:[#allocation4] sm:$0xff] }
  0x14   :  { %v54_v13 = vld [vmem:[#allocation2] sm:$0xff] }
  0x15   :  { %v96_v33 = vld [vmem:[#allocation5] sm:$0xff] }
  0x16   :  { %v60_v42 = vld [vmem:[#allocation3] sm:$0xff] }
  0x17   :  { %57 = vmax.xlane.f32.xlu0 %v56_v6  ;;  %v103_v34 = vld [vmem:[#allocation6] sm:$0xff] }
  0x82   :  { %v83_v10 = vpop.xlane.xlu0 %82 }
  0x83   :  { %v84_v11 = vmax.f32 %v80_v9, %v83_v10 }
  0x85   :  { %v85_v12 = vsub.f32 %v80_v9, %v84_v11  ;;  %112 = vst.msk [vmem:[#allocation4] sm:$0xff] %vm44_vm0, %v84_v11  ;;  %90 = vperm.xlu1 %177, %v84_v11  }
  0x87   :  { %v86_v30 = vmul.f32 1.442695, %v85_v12 }
  0x8a   :  { %v58_v14 = vpop.xlane.xlu0 %57 }
  0x8b   :  { %v59_v15 = vmax.f32 %v54_v13, %v58_v14 }
  0x8c   :  { %v134_v59 = vld [vmem:[#allocation4] sm:$0xff] }
  0x8d   :  { %v61_v16 = vsub.f32 %v54_v13, %v59_v15  ;;  %79 = vst.msk [vmem:[#allocation2] sm:$0xff] %vm44_vm0, %v59_v15  ;;  %67 = vperm.xlu1 %177, %v59_v15  }
  0x8f   :  { %v62_v31 = vmul.f32 1.442695, %v61_v16 }
  0x94   :  { %v133_v54 = vld [vmem:[#allocation2] sm:$0xff] }
  0x95   :  { %v135_v61 = vsub.f32 %v133_v54, %v134_v59 }
  0xf7   :  { %v91_v17 = vpop.permute.xlu1 %90 }
  0xf8   :  { %v93_v18 = vsub.f32 %v53_v2, %v91_v17 }
  0xfa   :  { %v94_v19 = vmul.f32 1.442695, %v93_v18 }
  0xfc   :  { %179 = vpow2.f32 %v94_v19 }
  0xff   :  { %v68_v20 = vpop.permute.xlu1 %67 }
 0x100   :  { %v70_v22 = vsub.f32 %v52_v5, %v68_v20 }
 0x102   :  { %v180_v23 = vpop.eup %179  ;;  %v71_v24 = vmul.f32 1.442695, %v70_v22 }
 0x103   :  { %v98_v25 = vsel %vm55_vm1, %v180_v23, 0.0  ;;  %v106_v26 = vmul.f32 %v180_v23, %v105_v21 }
 0x104   :  { %181 = vpow2.f32 %v71_v24  ;;  %99 = vadd.xlane.f32.xlu2 %v98_v25 }
 0x105   :  { %v107_v27 = vsel %vm55_vm1, %v106_v26, 0.0  ;;  %183 = vpow2.f32 %v86_v30 }
 0x106   :  { %108 = vadd.xlane.f32.xlu0 %v107_v27  ;;  %185 = vpow2.f32 %v62_v31 }
 0x10a   :  { %v182_v28 = vpop.eup %181 }
 0x10b   :  { %v73_v29 = vsel %vm55_vm1, %v182_v28, 0.0  ;;  %v184_v32 = vpop.eup %183 }
 0x10c   :  { %74 = vadd.xlane.f32.xlu2 %v73_v29  ;;  %v97_v35 = vmul.f32 %v184_v32, %v96_v33  ;;  %v104_v38 = vmul.f32 %v184_v32, %v103_v34  ;;  %v186_v41 = vpop.eup %185 }
 0x10d   :  { %v64_v43 = vmul.f32 %v186_v41, %v60_v42 }
 0x177   :  { %v100_v36 = vpop.xlane.xlu2 %99 }
 0x178   :  { %v101_v37 = vadd.f32 %v100_v36, %v97_v35 }
 0x179   :  { %v109_v39 = vpop.xlane.xlu0 %108 }
 0x17a   :  { %102 = vst.msk [vmem:[#allocation5] sm:$0xff] %vm44_vm0, %v101_v37  ;;  %v110_v40 = vadd.f32 %v109_v39, %v104_v38 }
 0x17c   :  { %111 = vst.msk [vmem:[#allocation6] sm:$0xff] %vm44_vm0, %v110_v40 }
 0x17f   :  { %v75_v44 = vpop.xlane.xlu2 %74 }
 0x180   :  { %v76_v45 = vadd.f32 %v75_v44, %v64_v43 }
 0x181   :  { %v117_v46 = vld [vmem:[#allocation5] sm:$0xff] }
 0x182   :  { %78 = vst.msk [vmem:[#allocation3] sm:$0xff] %vm44_vm0, %v76_v45  ;;  %187 = vrcp.f32 %v117_v46  ;;  %v129_v51 = vand.u32 2147483648, %v117_v46  ;;  %v127_v53 = vand.u32 2147483647, %v117_v46  ;;  %vm123_vm3 = vweird.f32 %v117_v46 }
 0x183   :  { %189 = vlog2.f32 %v117_v46  ;;  %v116_v2 = vld [vmem:[#allocation6] sm:$0xff] }
 0x184   :  { %v130_v58 = vor.u32 1.1754944e-38, %v129_v51  ;;  %vm128_vm5 = vcmp.eq.f32.partialorder %v127_v53, 8.507059e+37 }
 0x188   :  { %v188_v47 = vpop.eup %187 }
 0x189   :  { %v119_v48 = vmul.f32 %v188_v47, %v117_v46  ;;  %v136_v49 = vld [vmem:[#allocation3] sm:$0xff]  ;;  %vm124_vm2 = vweird.f32 %v188_v47  ;;  %v190_v55 = vpop.eup %189 }
 0x18a   :  { %191 = vlog2.f32 %v136_v49  ;;  %vm125_vm4 = vmor %vm123_vm3, %vm124_vm2  ;;  %v141_v1 = vmul.f32 0.6931472, %v190_v55 }
 0x18b   :  { %v120_v50 = vsub.f32 1.0, %v119_v48 }
 0x18d   :  { %v121_v52 = vmul.f32 %v188_v47, %v120_v50 }
 0x18f   :  { %v122_v56 = vadd.f32 %v188_v47, %v121_v52 }
 0x190   :  { %v192_v57 = vpop.eup %191 }
 0x191   :  { %v126_v60 = vsel %vm125_vm4, %v188_v47, %v122_v56  ;;  %v138_v62 = vmul.f32 0.6931472, %v192_v57 }
 0x192   :  { %v131_v63 = vsel %vm128_vm5, %v130_v58, %v126_v60 }
 0x193   :  { %v139_v0 = vadd.f32 %v138_v62, %v135_v61  ;;  %v132_v3 = vmul.f32 %v131_v63, %v116_v2 }
 0x195   :  { %v142_v4 = vsub.f32 %v139_v0, %v141_v1 }
 0x197   :  { %v143_v5 = vadd.f32 %v142_v4, %v132_v3 }
 0x199   :  { %v144_v6 = vsel %vm44_vm0, %v143_v5, 0.0 }
 0x19a   :  { %v145_v7 = vrot.slane %v144_v6, 4 }
 0x19c   :  { %v146_v8 = vadd.f32 %v145_v7, %v144_v6 }
 0x19e   :  { %v147_v9 = vrot.slane %v146_v8, 2 }
 0x1a0   :  { %v148_v10 = vadd.f32 %v147_v9, %v146_v8 }
 0x1a2   :  { %v149_v11 = vrot.slane %v148_v10, 1 }
 0x1a4   :  { %v150_v12 = vadd.f32 %v149_v11, %v148_v10 }
 0x1a6   :  { %152 = vst.msk [vmem:[#allocation12] sm:$0x1] %vm151_vm6, %v150_v12 }
 0x1a7   :  { %163 = dma.vmem_to_hbm [thread:$0]  %s159_s1, 16, %s161_s21, [#allocation9]  }
 0x1a8   :  { %269 = dma.done.wait [#allocation9], 16  }
 0x1a9   :  { %270 = vsyncadd [#allocation9], 4294967280 }
 0x1aa   :  { %168 = vsyncpa [#allocation8], 1 }
 0x1ab   :  { %169 = vsyncpa [#allocation11], 1 }
 0x1ac   :  { %170 = vsyncpa [#allocation9], 1 }

</bundles_post_ra>
